<compile_context>
chip_gen: v6e
topology: v6e:2x2x1
jax: 0.10.0
libtpu: 0.0.40
codegen_flags: <defaults>
</compile_context>

<pallas_src>
import functools

import jax
import jax.numpy as jnp
from jax.experimental import pallas as pl
from jax.experimental.pallas import tpu as pltpu

_LANES = 128


def _gtconv_kernel(w_ref, a_ref, o_ref):
    # w_ref : SMEM (C_out, C_in)   -- softmax(weight), precomputed in the wrapper
    # a_ref : VMEM (C_in,  TR, L)  -- spatial slab of the adjacency stack
    # o_ref : VMEM (C_out, TR, L)
    c_in = a_ref.shape[0]
    c_out = o_ref.shape[0]

    # Each channel slab is loaded from VMEM exactly once and reused for every
    # output channel (pure vector loads; the tiny contraction stays on the VPU).
    a = [a_ref[c].astype(jnp.float32) for c in range(c_in)]

    for o in range(c_out):
        acc = w_ref[o, 0] * a[0]
        for c in range(1, c_in):
            acc = acc + w_ref[o, c] * a[c]
        o_ref[o] = acc.astype(o_ref.dtype)


def _tpu_generation():
    try:
        kind = jax.devices()[0].device_kind.lower()
    except Exception:
        return 0
    for g in (7, 6, 5):
        if f"v{g}" in kind:
            return g
    return 0


def _sublane_quantum(*dtypes):
    # 8 for 4-byte, 16 for 2-byte, 32 for 1-byte element types.
    q = 8
    for dt in dtypes:
        itemsize = max(1, jnp.dtype(dt).itemsize)
        q = max(q, 8 * (4 // itemsize))
    return q


def _a_block_spec(block_shape, index_map, depth):
    # Deeper input buffering (v7x); fall back silently if the installed Pallas
    # version does not accept pipeline_mode.
    if depth > 2:
        try:
            return pl.BlockSpec(block_shape, index_map,
                                pipeline_mode=pl.Buffered(depth))
        except TypeError:
            pass
    return pl.BlockSpec(block_shape, index_map)


@functools.partial(jax.jit, static_argnames=("tile_rows", "out_dtype"))
def gtconv_forward(A, weight, *, tile_rows=None, out_dtype=None):
    """GTConv forward. A: (C_in, N, N), weight: (C_out, C_in, 1, 1) -> (C_out, N, N)."""
    c_in, n, n2 = A.shape
    assert n == n2, "adjacency matrices must be square"
    c_out = weight.shape[0]
    out_dtype = jnp.dtype(A.dtype if out_dtype is None else out_dtype)
    in_itemsize = jnp.dtype(A.dtype).itemsize
    out_itemsize = out_dtype.itemsize

    # Softmax over in-channels (dim=1 of the (C_out, C_in, 1, 1) weight), hoisted
    # out of the per-tile kernel body; weights become SMEM scalars.
    w_soft = jax.nn.softmax(weight.reshape(c_out, c_in).astype(jnp.float32), axis=1)

    m = n * n
    if m % _LANES == 0:
        # Lane-dense view (row-major reshape == bitcast, zero extra HBM traffic),
        # fully unmasked 128-lane stores.
        rows, lanes = m // _LANES, _LANES
        a_view = A.reshape(c_in, rows, lanes)
        out_view_shape = (c_out, rows, lanes)
    else:
        # Tile the adjacency directly over its first spatial dim; the last block
        # dim equals the full array dim so no (8,128) constraint applies to it,
        # and no wrapper-side pad/slice passes are needed.
        rows, lanes = n, n
        a_view = A
        out_view_shape = (c_out, n, n)

    # ---- generation- and dtype-aware tile selection ---------------------------
    gen = _tpu_generation()
    q = _sublane_quantum(A.dtype, out_dtype)
    if gen == 7:
        ws_cap, in_depth, vmem_limit, num_cores = 12 << 20, 3, 32 << 20, 2
    elif gen in (5, 6):
        ws_cap, in_depth, vmem_limit, num_cores = 24 << 20, 2, 64 << 20, 1
    else:
        ws_cap, in_depth, vmem_limit, num_cores = 12 << 20, 2, 32 << 20, 1

    lane_pad = pl.cdiv(lanes, _LANES) * _LANES  # VMEM lane padding per row
    per_row = (in_depth * c_in * in_itemsize + 2 * c_out * out_itemsize) * lane_pad
    cap_rows = max(q, (ws_cap // per_row) // q * q)
    tr_target = min(tile_rows or 4096, cap_rows)

    if rows <= max(tr_target, q):
        tr = rows                       # single block; block dim == array dim
    else:
        tr = max(q, (tr_target // q) * q)

    # On dual-core parts, make sure the "parallel" grid axis has enough steps to
    # shard across both TensorCores.
    min_steps = 4 * (num_cores - 1)
    if min_steps and pl.cdiv(rows, tr) < min_steps and rows >= min_steps * q:
        tr = max(q, (pl.cdiv(rows, min_steps) // q) * q)

    grid = (pl.cdiv(rows, tr),)

    cost = pl.CostEstimate(
        flops=2 * c_in * c_out * m,
        transcendentals=0,
        bytes_accessed=m * (c_in * in_itemsize + c_out * out_itemsize),
    )

    out = pl.pallas_call(
        _gtconv_kernel,
        out_shape=jax.ShapeDtypeStruct(out_view_shape, out_dtype),
        grid_spec=pltpu.PrefetchScalarGridSpec(
            num_scalar_prefetch=0,
            grid=grid,
            in_specs=[
                # Tiny softmaxed weight: whole array, resident in SMEM.
                pl.BlockSpec(memory_space=pltpu.MemorySpace.SMEM),
                # Spatial slab of the adjacency stack (optionally 3-deep buffered).
                _a_block_spec((c_in, tr, lanes), lambda i: (0, i, 0), in_depth),
            ],
            out_specs=pl.BlockSpec((c_out, tr, lanes), lambda i: (0, i, 0)),
        ),
        compiler_params=pltpu.CompilerParams(
            dimension_semantics=("parallel",),
            vmem_limit_bytes=vmem_limit,
        ),
        cost_estimate=cost,
    )(w_soft, a_view)

    return out.reshape(c_out, n, n)


def _reference(A, weight):
    w_soft = jax.nn.softmax(weight, axis=1)            # (C_out, C_in, 1, 1)
    return jnp.sum(A[None, :, :, :] * w_soft, axis=1)  # (C_out, N, N)


if __name__ == "__main__":
    in_channels, out_channels, n = 4, 2, 16

    # Deterministic parameter init (matches nn.init.constant_(self.weight, 0.1)).
    # TODO(synk): self.scale is a frozen parameter unused by forward(); omitted.
    weight = jnp.full((out_channels, in_channels, 1, 1), 0.1, dtype=jnp.float32)

    key = jax.random.PRNGKey(0)
    A = jax.random.uniform(key, (in_channels, n, n), dtype=jnp.float32)

    out = jax.block_until_ready(gtconv_forward(A, weight))
    assert out.shape == (out_channels, n, n)
    assert jnp.allclose(out, _reference(A, weight), atol=1e-5, rtol=1e-5)

    # Non-multiple-of-128 spatial size + forced multi-tile grid: exercises the
    # direct (C_in, N, N) path with a partial last block (no pad/slice passes).
    n2 = 45
    w2 = jax.random.normal(jax.random.fold_in(key, 1),
                           (out_channels, in_channels, 1, 1), dtype=jnp.float32)
    A2 = jax.random.uniform(jax.random.fold_in(key, 2),
                            (in_channels, n2, n2), dtype=jnp.float32)
    out2 = jax.block_until_ready(gtconv_forward(A2, w2, tile_rows=8))
    assert out2.shape == (out_channels, n2, n2)
    assert jnp.allclose(out2, _reference(A2, w2), atol=1e-5, rtol=1e-5)

    # Lane-dense multi-tile path (N*N % 128 == 0, several grid steps).
    n3 = 128
    A3 = jax.random.uniform(jax.random.fold_in(key, 3),
                            (in_channels, n3, n3), dtype=jnp.float32)
    out3 = jax.block_until_ready(gtconv_forward(A3, weight, tile_rows=32))
    assert jnp.allclose(out3, _reference(A3, weight), atol=1e-5, rtol=1e-5)

    print("KERNEL_OK")
</pallas_src>

<mosaic_0001>
module attributes {stable_mosaic.version = 11 : i64} {
  func.func @_gtconv_kernel(%arg0: i32, %arg1: memref<2x4xf32, #tpu.memory_space<smem>>, %arg2: memref<4x2x128xf32, #tpu.memory_space<vmem>>, %arg3: memref<2x2x128xf32, #tpu.memory_space<vmem>>) attributes {dimension_semantics = [#tpu.dimension_semantics<parallel>], iteration_bounds = array<i64: 1>, scalar_prefetch = 0 : i64, scratch_operands = 0 : i64, tpu.core_type = #tpu.core_type<tc>, window_params = [{transform_indices = @transform_0, window_bounds = array<i64: 2, 4>}, {transform_indices = @transform_1, window_bounds = array<i64: 4, 2, 128>}, {transform_indices = @transform_2, window_bounds = array<i64: 2, 2, 128>}]} {
    %c0 = arith.constant 0 : index
    %c0_0 = arith.constant 0 : index
    %c0_1 = arith.constant 0 : index
    %0 = vector.load %arg2[%c0, %c0_0, %c0_1] : memref<4x2x128xf32, #tpu.memory_space<vmem>>, vector<1x2x128xf32>
    %1 = vector.shape_cast %0 : vector<1x2x128xf32> to vector<2x128xf32>
    %c1 = arith.constant 1 : index
    %c0_2 = arith.constant 0 : index
    %c0_3 = arith.constant 0 : index
    %2 = vector.load %arg2[%c1, %c0_2, %c0_3] : memref<4x2x128xf32, #tpu.memory_space<vmem>>, vector<1x2x128xf32>
    %3 = vector.shape_cast %2 : vector<1x2x128xf32> to vector<2x128xf32>
    %c2 = arith.constant 2 : index
    %c0_4 = arith.constant 0 : index
    %c0_5 = arith.constant 0 : index
    %4 = vector.load %arg2[%c2, %c0_4, %c0_5] : memref<4x2x128xf32, #tpu.memory_space<vmem>>, vector<1x2x128xf32>
    %5 = vector.shape_cast %4 : vector<1x2x128xf32> to vector<2x128xf32>
    %c3 = arith.constant 3 : index
    %c0_6 = arith.constant 0 : index
    %c0_7 = arith.constant 0 : index
    %6 = vector.load %arg2[%c3, %c0_6, %c0_7] : memref<4x2x128xf32, #tpu.memory_space<vmem>>, vector<1x2x128xf32>
    %7 = vector.shape_cast %6 : vector<1x2x128xf32> to vector<2x128xf32>
    %c0_8 = arith.constant 0 : index
    %c0_9 = arith.constant 0 : index
    %8 = memref.load %arg1[%c0_8, %c0_9] : memref<2x4xf32, #tpu.memory_space<smem>>
    %9 = vector.broadcast %8 : f32 to vector<2x128xf32>
    %10 = arith.mulf %9, %1 : vector<2x128xf32>
    %c0_10 = arith.constant 0 : index
    %c1_11 = arith.constant 1 : index
    %11 = memref.load %arg1[%c0_10, %c1_11] : memref<2x4xf32, #tpu.memory_space<smem>>
    %12 = vector.broadcast %11 : f32 to vector<2x128xf32>
    %13 = arith.mulf %12, %3 : vector<2x128xf32>
    %14 = arith.addf %10, %13 : vector<2x128xf32>
    %c0_12 = arith.constant 0 : index
    %c2_13 = arith.constant 2 : index
    %15 = memref.load %arg1[%c0_12, %c2_13] : memref<2x4xf32, #tpu.memory_space<smem>>
    %16 = vector.broadcast %15 : f32 to vector<2x128xf32>
    %17 = arith.mulf %16, %5 : vector<2x128xf32>
    %18 = arith.addf %14, %17 : vector<2x128xf32>
    %c0_14 = arith.constant 0 : index
    %c3_15 = arith.constant 3 : index
    %19 = memref.load %arg1[%c0_14, %c3_15] : memref<2x4xf32, #tpu.memory_space<smem>>
    %20 = vector.broadcast %19 : f32 to vector<2x128xf32>
    %21 = arith.mulf %20, %7 : vector<2x128xf32>
    %22 = arith.addf %18, %21 : vector<2x128xf32>
    %c0_16 = arith.constant 0 : index
    %c0_17 = arith.constant 0 : index
    %c0_18 = arith.constant 0 : index
    %23 = vector.load %arg3[%c0_16, %c0_17, %c0_18] : memref<2x2x128xf32, #tpu.memory_space<vmem>>, vector<1x2x128xf32>
    %24 = vector.shape_cast %23 : vector<1x2x128xf32> to vector<2x128xf32>
    %25 = vector.shape_cast %22 : vector<2x128xf32> to vector<1x2x128xf32>
    tpu.vector_store %arg3[%c0_16, %c0_17, %c0_18], %25 {strides = array<i32>} : memref<2x2x128xf32, #tpu.memory_space<vmem>>, vector<1x2x128xf32>,
    %c1_19 = arith.constant 1 : index
    %c0_20 = arith.constant 0 : index
    %26 = memref.load %arg1[%c1_19, %c0_20] : memref<2x4xf32, #tpu.memory_space<smem>>
    %27 = vector.broadcast %26 : f32 to vector<2x128xf32>
    %28 = arith.mulf %27, %1 : vector<2x128xf32>
    %c1_21 = arith.constant 1 : index
    %c1_22 = arith.constant 1 : index
    %29 = memref.load %arg1[%c1_21, %c1_22] : memref<2x4xf32, #tpu.memory_space<smem>>
    %30 = vector.broadcast %29 : f32 to vector<2x128xf32>
    %31 = arith.mulf %30, %3 : vector<2x128xf32>
    %32 = arith.addf %28, %31 : vector<2x128xf32>
    %c1_23 = arith.constant 1 : index
    %c2_24 = arith.constant 2 : index
    %33 = memref.load %arg1[%c1_23, %c2_24] : memref<2x4xf32, #tpu.memory_space<smem>>
    %34 = vector.broadcast %33 : f32 to vector<2x128xf32>
    %35 = arith.mulf %34, %5 : vector<2x128xf32>
    %36 = arith.addf %32, %35 : vector<2x128xf32>
    %c1_25 = arith.constant 1 : index
    %c3_26 = arith.constant 3 : index
    %37 = memref.load %arg1[%c1_25, %c3_26] : memref<2x4xf32, #tpu.memory_space<smem>>
    %38 = vector.broadcast %37 : f32 to vector<2x128xf32>
    %39 = arith.mulf %38, %7 : vector<2x128xf32>
    %40 = arith.addf %36, %39 : vector<2x128xf32>
    %c1_27 = arith.constant 1 : index
    %c0_28 = arith.constant 0 : index
    %c0_29 = arith.constant 0 : index
    %41 = vector.load %arg3[%c1_27, %c0_28, %c0_29] : memref<2x2x128xf32, #tpu.memory_space<vmem>>, vector<1x2x128xf32>
    %42 = vector.shape_cast %41 : vector<1x2x128xf32> to vector<2x128xf32>
    %43 = vector.shape_cast %40 : vector<2x128xf32> to vector<1x2x128xf32>
    tpu.vector_store %arg3[%c1_27, %c0_28, %c0_29], %43 {strides = array<i32>} : memref<2x2x128xf32, #tpu.memory_space<vmem>>, vector<1x2x128xf32>,
    return
  }
  func.func @transform_0(%arg0: i32) -> (i32, i32) {
    %c0_i32 = arith.constant 0 : i32
    %c0_i32_0 = arith.constant 0 : i32
    %c0_i32_1 = arith.constant 0 : i32
    return %c0_i32, %c0_i32_0 : i32, i32
  }
  func.func @transform_1(%arg0: i32) -> (i32, i32, i32) {
    %c0_i32 = arith.constant 0 : i32
    %c0_i32_0 = arith.constant 0 : i32
    %c0_i32_1 = arith.constant 0 : i32
    return %c0_i32, %arg0, %c0_i32_0 : i32, i32, i32
  }
  func.func @transform_2(%arg0: i32) -> (i32, i32, i32) {
    %c0_i32 = arith.constant 0 : i32
    %c0_i32_0 = arith.constant 0 : i32
    %c0_i32_1 = arith.constant 0 : i32
    return %c0_i32, %arg0, %c0_i32_0 : i32, i32, i32
  }
}

</mosaic_0001>

<bundles_post_ra>
// kernel: gtconv_forward.1
= control target key start
LH: loop header
LB: loop body
LE: loop exit
PB: predicated region body
PF: predicated region fallthrough
CT: control target
= control target key end

     0   :  { %7 = vsyncpa [#allocation3], 0  ;;  %s132_s0 = inlined_call_operand.vmem [shape: f32[2,4], index: 0, kind: input, shape index: {}]   ;;  %s133_s1 = inlined_call_operand.vmem [shape: f32[4,2,128], index: 1, kind: input, shape index: {}]   ;;  %s134_s2 = inlined_call_operand.vmem [shape: f32[2,2,128], index: 2, kind: output, shape index: {}]  }
   0x1   :  { %s14_s11 = sshll.u32 %s132_s0, 4  ;;  %s15_s11 = int_to_ptr.vmem [resolvable:$true] %s14_s11 }
   0x2   :  { %s81_s12 = scalar_lea.vmem %s15_s11, 32  ;;  %p86_p1 = scmp.lt.s32.totalorder %s15_s11, %s15_s11 }
   0x3   :  { %p82_p0 = scmp.ne.s32.totalorder %s15_s11, %s81_s12  ;;  %p87_p2 = scmp.lt.s32.totalorder %s81_s12, %s81_s12 }
   0x5   :  { %p88_p3 = por %p87_p2, %p86_p1 }
   0x7   :  { %p89_p4 = pnand %p88_p3, %p82_p0 }
   0x9   :  { %92 = shalt.err (!%p89_p4)
}
   0xa   :  { %s95_s13 = smov [#allocation2]  }
   0xb   :  { %17 = dma.vmem_to_smem %s15_s11, 32, %s95_s13, [#allocation3]  }
   0xc   :  { %93 = dma.done.wait [#allocation3], 32  }
   0xd   :  { %94 = vsyncadd [#allocation3], 4294967264 }
   0xe   :  { %23 = sfence }
   0xf   :  { %s31_s14 = sld [smem:[#allocation2]]  ;;  %v24_v0 = vld [vmem:[%s133_s1] sm:$0x3]  ;;  %v69_v1 = vld [vmem:[%s133_s1 + $0x2] sm:$0x3] }
  0x10   :  { %s72_s15 = sld [smem:[#allocation2 + $0x1]]  ;;  %v70_v2 = vld [vmem:[%s133_s1 + $0x4] sm:$0x3]  ;;  %v71_v4 = vld [vmem:[%s133_s1 + $0x6] sm:$0x3] }
  0x11   :  { %s73_s16 = sld [smem:[#allocation2 + $0x2]] }
  0x12   :  { %s74_s17 = sld [smem:[#allocation2 + $0x3]] }
  0x13   :  { %s75_s0 = sld [smem:[#allocation2 + $0x80]] }
  0x14   :  { %s76_s22 = sld [smem:[#allocation2 + $0x81]] }
  0x15   :  { %v32_v3 = vstv %s31_s14  ;;  %s77_s25 = sld [smem:[#allocation2 + $0x82]] }
  0x16   :  { %v33_v5 = vmul.f32 %v32_v3, %v24_v0  ;;  %v35_v6 = vstv %s72_s15  ;;  %s78_s28 = sld [smem:[#allocation2 + $0x83]] }
  0x17   :  { %v36_v7 = vmul.f32 %v69_v1, %v35_v6  ;;  %v39_v8 = vstv %s73_s16 }
  0x18   :  { %v40_v9 = vmul.f32 %v70_v2, %v39_v8  ;;  %v43_v10 = vstv %s74_s17 }
  0x19   :  { %v37_v11 = vadd.f32 %v36_v7, %v33_v5  ;;  %v44_v12 = vmul.f32 %v71_v4, %v43_v10  ;;  %v48_v13 = vstv %s75_s0 }
  0x1a   :  { %v49_v14 = vmul.f32 %v48_v13, %v24_v0  ;;  %v51_v15 = vstv %s76_s22 }
  0x1b   :  { %v41_v16 = vadd.f32 %v40_v9, %v37_v11  ;;  %v52_v17 = vmul.f32 %v69_v1, %v51_v15  ;;  %v55_v18 = vstv %s77_s25 }
  0x1c   :  { %v56_v19 = vmul.f32 %v70_v2, %v55_v18  ;;  %v59_v20 = vstv %s78_s28 }
  0x1d   :  { %v45_v21 = vadd.f32 %v44_v12, %v41_v16  ;;  %v53_v22 = vadd.f32 %v52_v17, %v49_v14  ;;  %v60_v23 = vmul.f32 %v71_v4, %v59_v20 }
  0x1f   :  { %46 = vst [vmem:[%s134_s2] sm:$0x3] %v45_v21  ;;  %v57_v24 = vadd.f32 %v56_v19, %v53_v22 }
  0x21   :  { %v61_v25 = vadd.f32 %v60_v23, %v57_v24 }
  0x23   :  { %79 = vst [vmem:[%s134_s2 + $0x2] sm:$0x3] %v61_v25 }
  0x24   :  { %68 = vsyncpa [#allocation3], 1 }

</bundles_post_ra>
